<compile_context>
chip_gen: v6e
topology: v6e:2x2x1
jax: 0.10.0
libtpu: 0.0.40
codegen_flags: <defaults>
</compile_context>

<pallas_src>
import jax
import jax.numpy as jnp
from jax.experimental import pallas as pl
from jax.experimental.pallas import tpu as pltpu

BATCH = 8      # batch size
D_AMB = 16     # ambient (extrinsic) dimension D
D_LAT = 4      # latent (intrinsic) dimension d
H_DEC = 32     # decoder hidden width
CW = 1.0       # contractive_weight (CHAELoss default)
HW = 1.0       # hessian_weight     (CHAELoss default)

# ---- parameter-slab layout (rows; matrices start on 8-sublane boundaries) ----
SLAB_COLS = 32                 # max(H_DEC, D_AMB, D_LAT)
R_WET = 0                      # We^T   (D_AMB, D_LAT)  rows  0..15
R_W1T = 16                     # W1^T   (D_LAT, H_DEC)  rows 16..19
R_BE = 20                      # be     (1, D_LAT)
R_RN2 = 21                     # ||We_i||^2 row  (1, D_LAT)
R_B1 = 22                      # b1     (1, H_DEC)
R_W2T = 24                     # W2^T   (H_DEC, D_AMB)  rows 24..55
R_B2 = 56                      # b2     (1, D_AMB)
SLAB_ROWS = 64                 # padded to a sublane multiple


def _chae_loss_kernel(x_ref, p_ref, out_ref):
    f32 = jnp.float32
    x = x_ref[...]                                          # (B, D)

    # static, zero-cost views into the packed parameter slab
    we_t = p_ref[R_WET:R_WET + D_AMB, 0:D_LAT]              # (D, d)
    w1_t = p_ref[R_W1T:R_W1T + D_LAT, 0:H_DEC]              # (d, H)
    be = p_ref[R_BE:R_BE + 1, 0:D_LAT]                      # (1, d)
    rn2 = p_ref[R_RN2:R_RN2 + 1, 0:D_LAT]                   # (1, d)
    b1 = p_ref[R_B1:R_B1 + 1, 0:H_DEC]                      # (1, H)
    w2_t = p_ref[R_W2T:R_W2T + H_DEC, 0:D_AMB]              # (H, D)
    b2 = p_ref[R_B2:R_B2 + 1, 0:D_AMB]                      # (1, D)

    # encoder: one small MXU matmul + whole-tile elementwise math
    h = jnp.dot(x, we_t, preferred_element_type=f32) + be   # (B, d)
    z = jnp.tanh(h)
    da = 1.0 - z * z                                        # tanh'
    d2a = -2.0 * z * da                                     # tanh''

    # ||dpi_b||_F^2      = sum_i tanh'(h_bi)^2  * ||We_i||^2
    # sum_i ||H_bi||_F^2 = sum_i tanh''(h_bi)^2 * ||We_i||^4
    contr = jnp.sum(da * da * rn2, keepdims=True)           # (1, 1)
    hess = jnp.sum(d2a * d2a * (rn2 * rn2), keepdims=True)  # (1, 1)

    # decoder: two MXU matmuls
    h1 = jnp.dot(z, w1_t, preferred_element_type=f32) + b1  # (B, H)
    a1 = jnp.tanh(h1)
    x_hat = jnp.dot(a1, w2_t, preferred_element_type=f32) + b2  # (B, D)

    diff = x_hat - x
    recon = jnp.sum(diff * diff, keepdims=True)             # (1, 1)

    inv_bd = 1.0 / float(BATCH * D_AMB)
    inv_b = 1.0 / float(BATCH)
    out_ref[...] = (recon * inv_bd
                    + contr * (CW * inv_b)
                    + hess * (HW * inv_b))


def pack_chae_params(params):
    """One-time packing of all CHAE parameters (+ precomputed ||We_i||^2)
    into a single padded f32 slab -> a single parameter DMA per kernel call."""
    we, be, w1, b1, w2, b2 = (p.astype(jnp.float32) for p in params)
    slab = jnp.zeros((SLAB_ROWS, SLAB_COLS), jnp.float32)
    slab = slab.at[R_WET:R_WET + D_AMB, 0:D_LAT].set(we.T)
    slab = slab.at[R_W1T:R_W1T + D_LAT, 0:H_DEC].set(w1.T)
    slab = slab.at[R_BE, 0:D_LAT].set(be.reshape(-1))
    slab = slab.at[R_RN2, 0:D_LAT].set(jnp.sum(we * we, axis=1))
    slab = slab.at[R_B1, 0:H_DEC].set(b1.reshape(-1))
    slab = slab.at[R_W2T:R_W2T + H_DEC, 0:D_AMB].set(w2.T)
    slab = slab.at[R_B2, 0:D_AMB].set(b2.reshape(-1))
    return slab


@jax.jit
def chae_loss_pallas(x, param_slab):
    """loss = MSE(x_hat, x) + cw * contractive_reg(dpi) + hw * hessian_reg(H)."""
    vmem_spec = pl.BlockSpec(memory_space=pltpu.MemorySpace.VMEM)
    out = pl.pallas_call(
        _chae_loss_kernel,
        out_shape=jax.ShapeDtypeStruct((1, 1), jnp.float32),
        in_specs=[vmem_spec, vmem_spec],
        out_specs=vmem_spec,
    )(x, param_slab)
    return out[0, 0]


def chae_loss_reference(x, params):
    """Pure-JAX reference mirroring the PyTorch CHAELoss.forward exactly
    (materialises dpi and the full Hessian, then takes Frobenius norms)."""
    we, be, w1, b1, w2, b2 = params
    h = x @ we.T + be                            # (B, d)
    z = jnp.tanh(h)
    da = 1.0 - z * z
    d2a = -2.0 * z * da
    x_hat = jnp.tanh(z @ w1.T + b1) @ w2.T + b2  # (B, D)

    dpi = da[:, :, None] * we[None, :, :]                          # (B, d, D)
    hessian_pi = (d2a[:, :, None, None]
                  * we[None, :, :, None] * we[None, :, None, :])   # (B, d, D, D)

    recon = jnp.mean((x_hat - x) ** 2)                             # nn.MSELoss
    contractive = jnp.mean(jnp.sum(dpi ** 2, axis=(1, 2)))         # mean ||dpi||_F^2
    hess_pen = jnp.mean(jnp.sum(hessian_pi ** 2, axis=(1, 2, 3)))  # mean sum_i ||H_i||_F^2
    return recon + CW * contractive + HW * hess_pen


if __name__ == "__main__":
    key = jax.random.PRNGKey(0)
    ks = jax.random.split(key, 8)
    f32 = jnp.float32

    def init(k, shape, scale=0.3):
        return (scale * jax.random.normal(k, shape)).astype(f32)

    # deterministic synthetic CHAE parameters
    we = init(ks[0], (D_LAT, D_AMB))           # encoder weight
    be = init(ks[1], (1, D_LAT), 0.1)          # encoder bias
    w1 = init(ks[2], (H_DEC, D_LAT))           # decoder layer 1 weight
    b1 = init(ks[3], (1, H_DEC), 0.1)          # decoder layer 1 bias
    w2 = init(ks[4], (D_AMB, H_DEC))           # decoder layer 2 weight
    b2 = init(ks[5], (1, D_AMB), 0.1)          # decoder layer 2 bias
    params = (we, be, w1, b1, w2, b2)

    x = init(ks[6], (BATCH, D_AMB), 1.0)

    # one-time packing (hoisted out of the hot path)
    param_slab = jax.block_until_ready(pack_chae_params(params))

    loss = jax.block_until_ready(chae_loss_pallas(x, param_slab))
    ref = jax.block_until_ready(chae_loss_reference(x, params))

    assert bool(jnp.isfinite(loss)), loss
    assert abs(float(loss) - float(ref)) <= 1e-3 * (abs(float(ref)) + 1.0), (loss, ref)
    print("KERNEL_OK")
</pallas_src>

<mosaic_0001>
module attributes {stable_mosaic.version = 11 : i64} {
  func.func @_chae_loss_kernel(%arg0: memref<8x16xf32, #tpu.memory_space<vmem>>, %arg1: memref<64x32xf32, #tpu.memory_space<vmem>>, %arg2: memref<1x1xf32, #tpu.memory_space<vmem>>) attributes {dimension_semantics = [], scalar_prefetch = 0 : i64, scratch_operands = 0 : i64, tpu.core_type = #tpu.core_type<tc>} {
    %c0 = arith.constant 0 : index
    %c0_0 = arith.constant 0 : index
    %0 = vector.load %arg0[%c0, %c0_0] : memref<8x16xf32, #tpu.memory_space<vmem>>, vector<8x16xf32>
    %c0_1 = arith.constant 0 : index
    %c0_2 = arith.constant 0 : index
    %1 = vector.load %arg1[%c0_1, %c0_2] : memref<64x32xf32, #tpu.memory_space<vmem>>, vector<16x4xf32>
    %c16 = arith.constant 16 : index
    %c0_3 = arith.constant 0 : index
    %2 = vector.load %arg1[%c16, %c0_3] : memref<64x32xf32, #tpu.memory_space<vmem>>, vector<4x32xf32>
    %c20 = arith.constant 20 : index
    %c0_4 = arith.constant 0 : index
    %3 = vector.load %arg1[%c20, %c0_4] : memref<64x32xf32, #tpu.memory_space<vmem>>, vector<1x4xf32>
    %c21 = arith.constant 21 : index
    %c0_5 = arith.constant 0 : index
    %4 = vector.load %arg1[%c21, %c0_5] : memref<64x32xf32, #tpu.memory_space<vmem>>, vector<1x4xf32>
    %c22 = arith.constant 22 : index
    %c0_6 = arith.constant 0 : index
    %5 = vector.load %arg1[%c22, %c0_6] : memref<64x32xf32, #tpu.memory_space<vmem>>, vector<1x32xf32>
    %c24 = arith.constant 24 : index
    %c0_7 = arith.constant 0 : index
    %6 = vector.load %arg1[%c24, %c0_7] : memref<64x32xf32, #tpu.memory_space<vmem>>, vector<32x16xf32>
    %c56 = arith.constant 56 : index
    %c0_8 = arith.constant 0 : index
    %7 = vector.load %arg1[%c56, %c0_8] : memref<64x32xf32, #tpu.memory_space<vmem>>, vector<1x16xf32>
    %cst = arith.constant dense<0.000000e+00> : vector<8x4xf32>
    %8 = tpu.matmul %0, %1, %cst {dimension_numbers = #tpu.dot_dimension_numbers<[1], [0], [0], [1], [0, 0, 1, 1], [], []>} : vector<8x16xf32>, vector<16x4xf32>, vector<8x4xf32> -> vector<8x4xf32>
    %9 = vector.broadcast %3 : vector<1x4xf32> to vector<8x4xf32>
    %10 = arith.addf %8, %9 : vector<8x4xf32>
    %11 = math.tanh %10 : vector<8x4xf32>
    %12 = arith.mulf %11, %11 : vector<8x4xf32>
    %cst_9 = arith.constant 1.000000e+00 : f32
    %13 = vector.broadcast %cst_9 : f32 to vector<8x4xf32>
    %14 = arith.subf %13, %12 : vector<8x4xf32>
    %cst_10 = arith.constant -2.000000e+00 : f32
    %15 = vector.broadcast %cst_10 : f32 to vector<8x4xf32>
    %16 = arith.mulf %15, %11 : vector<8x4xf32>
    %17 = arith.mulf %16, %14 : vector<8x4xf32>
    %18 = arith.mulf %14, %14 : vector<8x4xf32>
    %19 = vector.broadcast %4 : vector<1x4xf32> to vector<8x4xf32>
    %20 = arith.mulf %18, %19 : vector<8x4xf32>
    %21 = vector.shape_cast %20 : vector<8x4xf32> to vector<1x8x4xf32>
    %cst_11 = arith.constant dense<0.000000e+00> : vector<1xf32>
    %22 = vector.multi_reduction <add>, %21, %cst_11 [1, 2] : vector<1x8x4xf32> to vector<1xf32>
    %23 = vector.shape_cast %22 : vector<1xf32> to vector<1x1x1xf32>
    %24 = vector.extract %23[0, 0, 0] : f32 from vector<1x1x1xf32>
    %25 = vector.broadcast %24 : f32 to vector<1x1xf32>
    %26 = arith.mulf %17, %17 : vector<8x4xf32>
    %27 = arith.mulf %4, %4 : vector<1x4xf32>
    %28 = vector.broadcast %27 : vector<1x4xf32> to vector<8x4xf32>
    %29 = arith.mulf %26, %28 : vector<8x4xf32>
    %30 = vector.shape_cast %29 : vector<8x4xf32> to vector<1x8x4xf32>
    %cst_12 = arith.constant dense<0.000000e+00> : vector<1xf32>
    %31 = vector.multi_reduction <add>, %30, %cst_12 [1, 2] : vector<1x8x4xf32> to vector<1xf32>
    %32 = vector.shape_cast %31 : vector<1xf32> to vector<1x1x1xf32>
    %33 = vector.extract %32[0, 0, 0] : f32 from vector<1x1x1xf32>
    %34 = vector.broadcast %33 : f32 to vector<1x1xf32>
    %cst_13 = arith.constant dense<0.000000e+00> : vector<8x32xf32>
    %35 = tpu.matmul %11, %2, %cst_13 {dimension_numbers = #tpu.dot_dimension_numbers<[1], [0], [0], [1], [0, 0, 1, 1], [], []>} : vector<8x4xf32>, vector<4x32xf32>, vector<8x32xf32> -> vector<8x32xf32>
    %36 = vector.broadcast %5 : vector<1x32xf32> to vector<8x32xf32>
    %37 = arith.addf %35, %36 : vector<8x32xf32>
    %38 = math.tanh %37 : vector<8x32xf32>
    %cst_14 = arith.constant dense<0.000000e+00> : vector<8x16xf32>
    %39 = tpu.matmul %38, %6, %cst_14 {dimension_numbers = #tpu.dot_dimension_numbers<[1], [0], [0], [1], [0, 0, 1, 1], [], []>} : vector<8x32xf32>, vector<32x16xf32>, vector<8x16xf32> -> vector<8x16xf32>
    %40 = vector.broadcast %7 : vector<1x16xf32> to vector<8x16xf32>
    %41 = arith.addf %39, %40 : vector<8x16xf32>
    %42 = arith.subf %41, %0 : vector<8x16xf32>
    %43 = arith.mulf %42, %42 : vector<8x16xf32>
    %44 = vector.shape_cast %43 : vector<8x16xf32> to vector<1x8x16xf32>
    %cst_15 = arith.constant dense<0.000000e+00> : vector<1xf32>
    %45 = vector.multi_reduction <add>, %44, %cst_15 [1, 2] : vector<1x8x16xf32> to vector<1xf32>
    %46 = vector.shape_cast %45 : vector<1xf32> to vector<1x1x1xf32>
    %47 = vector.extract %46[0, 0, 0] : f32 from vector<1x1x1xf32>
    %48 = vector.broadcast %47 : f32 to vector<1x1xf32>
    %cst_16 = arith.constant 7.812500e-03 : f32
    %49 = vector.broadcast %cst_16 : f32 to vector<1x1xf32>
    %50 = arith.mulf %48, %49 : vector<1x1xf32>
    %cst_17 = arith.constant 1.250000e-01 : f32
    %51 = vector.broadcast %cst_17 : f32 to vector<1x1xf32>
    %52 = arith.mulf %25, %51 : vector<1x1xf32>
    %53 = arith.addf %50, %52 : vector<1x1xf32>
    %cst_18 = arith.constant 1.250000e-01 : f32
    %54 = vector.broadcast %cst_18 : f32 to vector<1x1xf32>
    %55 = arith.mulf %34, %54 : vector<1x1xf32>
    %56 = arith.addf %53, %55 : vector<1x1xf32>
    %c0_19 = arith.constant 0 : index
    %c0_20 = arith.constant 0 : index
    %57 = vector.load %arg2[%c0_19, %c0_20] : memref<1x1xf32, #tpu.memory_space<vmem>>, vector<1x1xf32>
    tpu.vector_store %arg2[%c0_19, %c0_20], %56 {strides = array<i32>} : memref<1x1xf32, #tpu.memory_space<vmem>>, vector<1x1xf32>,
    return
  }
}

</mosaic_0001>

<bundles_post_ra>
// kernel: chae_loss_pallas.1
= control target key start
LH: loop header
LB: loop body
LE: loop exit
PB: predicated region body
PF: predicated region fallthrough
CT: control target
= control target key end

     0   :  { %v412_v1 = vmov 0.0   ;;  %vm413_vm0 = vmmov 0   ;;  %s478_s0 = inlined_call_operand.vmem [shape: f32[8,16], index: 0, kind: input, shape index: {}]   ;;  %s479_s1 = inlined_call_operand.vmem [shape: f32[64,32], index: 1, kind: input, shape index: {}]   ;;  %s480_s2 = inlined_call_operand.hbm [shape: f32[1,1], index: 2, kind: output, shape index: {}]  }
   0x1   :  { %v14_v0 = vld [vmem:[%s479_s1 + $0x8] sm:$0xff]  ;;  %354 = vmatprep.subr.mxu0 %v412_v1  ;;  %v13_v2 = vld [vmem:[%s479_s1] sm:$0xff]  ;;  %358 = vmatprep.mubr.msk.f32.mxu0 %vm413_vm0, %v412_v1 }
   0x2   :  { %7 = vsyncpa [#allocation3], 0  ;;  %355 = vmatpush3.msra.mxu0 %v14_v0  ;;  %v439_v3 = vld [vmem:[%s478_s0] sm:$0xff]  ;;  %vm28_vm1 = vcmask 130048   ;;  %366 = vmatprep.subr.mxu1 %v412_v1  ;;  %v15_v4 = vld [vmem:[%s479_s1 + $0x10] sm:$0xf]  ;;  %v108_v9 = vlaneseq }
   0x3   :  { %356 = vmatprep.subr.mxu0 %v412_v1  ;;  %374 = vmatprep.mubr.msk.f32.mxu1 %vm413_vm0, %v412_v1  ;;  %vm150_vm2 = vcmask 1043456   ;;  %v337_v5 = vld [vmem:[%s479_s1 + $0x14] ss:$0 sm:$0xff]  ;;  %vm113_vm3 = vcmask 31744   ;;  %v17_v11 = vld [vmem:[%s479_s1 + $0x15] sm:$0x1] }
   0x4   :  { %357 = vmatpush3.msra.mxu0 %v13_v2  ;;  %v109_v10 = vshrl.u32 %v108_v9, 7  ;;  %v126_v15 = vmul.f32 %v17_v11, %v17_v11  ;;  %v22_v27 = vld [vmem:[%s479_s1 + $0x30] sm:$0xff]  ;;  %v21_v28 = vld [vmem:[%s479_s1 + $0x28] sm:$0xff]  ;;  %v20_v29 = vld [vmem:[%s479_s1 + $0x20] sm:$0xff]  ;;  %vm229_vm4 = vcmask 261120   ;;  %s414_s6 = smov [#allocation2]  }
   0x5   :  { %359 = vmatmul.mubr.msk.f32.vlgmr.msra.gmra.mxu0 %vm28_vm1, %v439_v3  ;;  %361 = vmatprep.subr.mxu0 %v412_v1  ;;  %v19_v30 = vld [vmem:[%s479_s1 + $0x18] sm:$0xff]  ;;  %v339_v45 = vld [vmem:[%s479_s1 + $0x16] ss:$0 sm:$0xff]  ;;  %s329_s7 = sshll.u32 %s414_s6, 4  ;;  %vm321_vm5 = vcmask 0   ;;  %s330_s7 = int_to_ptr.vmem [resolvable:$true] %s329_s7 }
   0x6   :  { %363 = vmatprep.mubr.msk.f32.mxu0 %vm413_vm0, %v412_v1  ;;  %362 = vmatpush3.msk.msra.mxu0 %vm150_vm2, %v15_v4  ;;  %v110_v12 = vsub.s32 0, %v109_v10  ;;  %v342_v50 = vld [vmem:[%s479_s1 + $0x38] ss:$0 sm:$0xff]  ;;  %s390_s8 = scalar_lea.vmem %s330_s7, 16  ;;  %s394_s9 = scalar_lea.vmem %s330_s7, 32 }
   0x7   :  { %367 = vmatpush3.msra.mxu1 %v22_v27  ;;  %p391_p0 = scmp.ne.s32.totalorder %s330_s7, %s390_s8  ;;  %p395_p1 = scmp.lt.s32.totalorder %s330_s7, %s330_s7 }
   0x8   :  { %v111_v17 = vrot.slane %v17_v11, %v110_v12  ;;  %v130_v21 = vrot.slane %v126_v15, %v110_v12  ;;  %368 = vmatprep.subr.mxu1 %v412_v1  ;;  %p396_p2 = scmp.lt.s32.totalorder %s394_s9, %s390_s8 }
   0x9   :  { %369 = vmatpush3.msra.mxu1 %v21_v28 }
   0xa   :  { %370 = vmatprep.subr.mxu1 %v412_v1  ;;  %p397_p3 = por %p396_p2, %p395_p1 }
   0xb   :  { %371 = vmatpush3.msra.mxu1 %v20_v29 }
   0xc   :  { %372 = vmatprep.subr.mxu1 %v412_v1  ;;  %p398_p4 = pnand %p397_p3, %p391_p0 }
   0xd   :  { %373 = vmatpush3.msra.mxu1 %v19_v30 }
  0xc5   :  { %v98_v6 = vpop.f32.mrf.mxu0 }
  0xc6   :  { %v99_v7 = vadd.f32 %v337_v5, %v98_v6 }
  0xc7   :  { %v360_v8 = vpop.f32.mrf.mxu0 }
  0xc8   :  { %386 = vtanh.f32 %v99_v7 }
  0xd5   :  { %v387_v13 = vpop.eup %386 }
  0xd6   :  { %364 = vmatmul.mubr.msk.f32.vlgmr.msra.gmra.mxu0 %vm113_vm3, %v387_v13  ;;  %v103_v14 = vmul.f32 %v387_v13, %v387_v13  ;;  %v105_v18 = vmul.f32 -2.0, %v387_v13 }
  0xd8   :  { %v104_v16 = vsub.f32 1.0, %v103_v14 }
  0xda   :  { %v107_v19 = vmul.f32 %v104_v16, %v104_v16  ;;  %v106_v20 = vmul.f32 %v105_v18, %v104_v16 }
  0xdc   :  { %v112_v22 = vmul.f32 %v111_v17, %v107_v19  ;;  %v125_v23 = vmul.f32 %v106_v20, %v106_v20 }
  0xde   :  { %v114_v24 = vsel %vm113_vm3, %v112_v22, 0.0  ;;  %v131_v25 = vmul.f32 %v130_v21, %v125_v23 }
  0xdf   :  { %115 = vadd.xlane.f32.xlu0 %v114_v24 }
  0xe0   :  { %v132_v26 = vsel %vm113_vm3, %v131_v25, 0.0 }
  0xe3   :  { %133 = vadd.xlane.f32.xlu0 %v132_v26 }
 0x168   :  { %v116_v31 = vpop.xlane.xlu0 %115 }
 0x169   :  { %v117_v32 = vrot.slane %v116_v31, 4 }
 0x16b   :  { %v118_v33 = vadd.f32 %v117_v32, %v116_v31 }
 0x16c   :  { %v134_v34 = vpop.xlane.xlu0 %133 }
 0x16d   :  { %v119_v35 = vrot.slane %v118_v33, 2  ;;  %v135_v36 = vrot.slane %v134_v34, 4 }
 0x16f   :  { %v136_v37 = vadd.f32 %v135_v36, %v134_v34  ;;  %v120_v38 = vadd.f32 %v119_v35, %v118_v33 }
 0x171   :  { %v137_v39 = vrot.slane %v136_v37, 2  ;;  %v121_v40 = vrot.slane %v120_v38, 1 }
 0x173   :  { %v138_v41 = vadd.f32 %v137_v39, %v136_v37  ;;  %v122_v42 = vadd.f32 %v121_v40, %v120_v38 }
 0x175   :  { %377 = vpush %v122_v42  ;;  %v139_v43 = vrot.slane %v138_v41, 1 }
 0x177   :  { %v140_v44 = vadd.f32 %v139_v43, %v138_v41 }
 0x179   :  { %379 = vpush %v140_v44 }
 0x196   :  { %v220_v46 = vpop.f32.mrf.mxu0 }
 0x197   :  { %v221_v47 = vadd.f32 %v339_v45, %v220_v46 }
 0x198   :  { %v365_v48 = vpop.f32.mrf.mxu0 }
 0x199   :  { %388 = vtanh.f32 %v221_v47 }
 0x1a6   :  { %v389_v49 = vpop.eup %388  ;;  %s378_s4 = spop %377 }
 0x1a7   :  { %375 = vmatmul.mubr.msk.f32.vlgmr.msra.gmra.mxu1 %vm229_vm4, %v389_v49  ;;  %v124_v0 = vstv %s378_s4 }
 0x1a8   :  { %v317_v4 = vmul.f32 0.125, %v124_v0 }
 0x1aa   :  { %s380_s5 = spop %379 }
 0x1ab   :  { %v142_v1 = vstv %s380_s5 }
 0x1ac   :  { %v319_v5 = vmul.f32 0.125, %v142_v1 }
 0x267   :  { %v299_v51 = vpop.f32.mrf.mxu1 }
 0x268   :  { %v300_v52 = vadd.f32 %v342_v50, %v299_v51 }
 0x269   :  { %v376_v53 = vpop.f32.mrf.mxu1 }
 0x26a   :  { %v303_v54 = vsub.f32 %v300_v52, %v439_v3 }
 0x26c   :  { %v304_v55 = vmul.f32 %v303_v54, %v303_v54 }
 0x26e   :  { %v305_v56 = vsel %vm28_vm1, %v304_v55, 0.0 }
 0x26f   :  { %306 = vadd.xlane.f32.xlu1 %v305_v56 }
 0x2f8   :  { %v307_v57 = vpop.xlane.xlu1 %306 }
 0x2f9   :  { %v308_v58 = vrot.slane %v307_v57, 4 }
 0x2fb   :  { %v309_v59 = vadd.f32 %v308_v58, %v307_v57 }
 0x2fd   :  { %v310_v60 = vrot.slane %v309_v59, 2 }
 0x2ff   :  { %v311_v61 = vadd.f32 %v310_v60, %v309_v59 }
 0x301   :  { %v312_v62 = vrot.slane %v311_v61, 1 }
 0x303   :  { %v313_v63 = vadd.f32 %v312_v62, %v311_v61 }
 0x305   :  { %381 = vpush %v313_v63 }
 0x336   :  { %s382_s1 = spop %381 }
 0x337   :  { %v315_v2 = vstv %s382_s1 }
 0x338   :  { %v316_v3 = vmul.f32 0.0078125, %v315_v2 }
 0x33a   :  { %v318_v6 = vadd.f32 %v317_v4, %v316_v3 }
 0x33c   :  { %v320_v7 = vadd.f32 %v319_v5, %v318_v6 }
 0x33e   :  { %322 = vst.msk [vmem:[#allocation2] sm:$0x1] %vm321_vm5, %v320_v7 }
 0x33f   :  { %401 = shalt.err (!%p398_p4)
}
 0x340   :  { %332 = dma.vmem_to_hbm [thread:$0]  %s330_s7, 16, %s480_s2, [#allocation3]  }
 0x341   :  { %410 = dma.done.wait [#allocation3], 16  }
 0x342   :  { %411 = vsyncadd [#allocation3], 4294967280 }
 0x343   :  { %336 = vsyncpa [#allocation3], 1 }

</bundles_post_ra>
